<compile_context>
chip_gen: v7x
topology: tpu7x:2x2x1
jax: 0.10.0
libtpu: 0.0.40
codegen_flags: <defaults>
</compile_context>

<pallas_src>
import functools

import jax
import jax.numpy as jnp
from jax import lax
from jax.experimental import pallas as pl
from jax.experimental.pallas import tpu as pltpu


def _fused_conv1d_kernel(x_ref, mask_ref, w1_ref, w2_ref, w3_ref, b_ref, o_ref,
                         *, L, S):
    # x_ref   : (Cin,  bb*S)   layer-1 input; bb lane-aligned segments of width S,
    #                          columns >= L inside each segment are zero.
    # mask_ref: (1,    bb*S)   1.0 on valid columns, 0.0 on pad columns (resident).
    # w*_ref  : (3, Cout, Cl)  per-tap weight matrices (tap 0 = left neighbour).
    # b_ref   : (Cout, 3)      biases, one column per conv layer.
    # o_ref   : (1, Cout, bb)  pooled output block (max + mean per segment).
    Cout = o_ref.shape[1]
    bb = o_ref.shape[2]

    mask = mask_ref[...]                       # (1, W) float mask, loaded once
    biases = b_ref[...]                        # (Cout, 3), one tiny DMA

    def conv_relu(h, w_ref, layer):
        # Invariant on h: every pad column is exactly 0, so the shifted taps
        # below automatically read 0 across per-batch segment boundaries
        # (S >= L + 1 guarantees at least one zero column per segment).
        cz = jnp.zeros((h.shape[0], 1), h.dtype)
        h_m1 = jnp.concatenate([cz, h[:, :-1]], axis=1)   # h[:, i-1] (left tap)
        h_p1 = jnp.concatenate([h[:, 1:], cz], axis=1)    # h[:, i+1] (right tap)
        z = jnp.dot(w_ref[0], h_m1, preferred_element_type=jnp.float32)
        z = z + jnp.dot(w_ref[1], h, preferred_element_type=jnp.float32)
        z = z + jnp.dot(w_ref[2], h_p1, preferred_element_type=jnp.float32)
        z = jnp.maximum(z + biases[:, layer:layer + 1], 0.0)
        # Re-establish the invariant: pad columns -> 0 (one VPU multiply).
        return z * mask

    h = conv_relu(x_ref[...], w1_ref, 0)       # conv1 + ReLU (dropout = identity)
    h = conv_relu(h, w2_ref, 1)                # conv2 + ReLU
    h = conv_relu(h, w3_ref, 2)                # conv3 + ReLU

    # Fused global max + avg pool.  Segments are lane-group aligned so each
    # slice is a clean extract; pad columns are 0 (and ReLU output >= 0), so
    # reducing over the whole segment is exact.  One lane-dense store.
    inv_l = 1.0 / L
    cols = []
    for b in range(bb):                        # bb is small & static -> unrolled
        seg = h[:, b * S:(b + 1) * S]
        cols.append(jnp.max(seg, axis=1, keepdims=True)
                    + jnp.sum(seg, axis=1, keepdims=True) * inv_l)
    o_ref[0] = jnp.concatenate(cols, axis=1).astype(o_ref.dtype)


def conv1d_forward(x, params, *, block_b=None):
    """Mirror of the PyTorch Conv1d.forward. x: (B, L, input_dim) -> (B, channel)."""
    B, L, input_dim = x.shape
    channel, _, K = params["w1"].shape
    assert K == 3, "padding=1 'same' conv path assumes kernel_size == 3"

    # Per-batch lane-aligned segment width: >= L+1 (so every segment ends in at
    # least one zero column) rounded up to a multiple of 128 lanes.
    S = ((L + 1 + 127) // 128) * 128

    if block_b is None:
        # Cap the per-step lane width at ~1024 (h / h_m1 / h_p1 / z are all live
        # in vregs); pick the largest divisor of B under that cap.
        cap = max(1, 1024 // S)
        block_b = 1
        for d in range(min(B, cap), 0, -1):
            if B % d == 0:
                block_b = d
                break
    assert B % block_b == 0, (B, block_b)
    grid = (B // block_b,)
    W = block_b * S

    # Layout plumbing (tiny XLA copies): channels -> sublanes, lane-aligned
    # zero-padded segments, per-tap weight matrices, stacked biases, pad mask.
    # TODO(synk): for large inputs fuse this transpose/pad into the producer (or
    # DMA the natural (B, L, Cin) layout per tile) to avoid the extra HBM pass.
    x2d = jnp.pad(jnp.transpose(x, (2, 0, 1)), ((0, 0), (0, 0), (0, S - L)))
    x2d = x2d.reshape(input_dim, B * S)                                  # (Cin, B*S)
    w1 = jnp.transpose(params["w1"], (2, 0, 1))                          # (K, Cout, Cin)
    w2 = jnp.transpose(params["w2"], (2, 0, 1))                          # (K, Cout, Cout)
    w3 = jnp.transpose(params["w3"], (2, 0, 1))
    b_all = jnp.stack([params["b1"], params["b2"], params["b3"]], axis=1)  # (Cout, 3)
    mask = ((jnp.arange(W) % S) < L).astype(jnp.float32).reshape(1, W)   # (1, W)

    kernel = functools.partial(_fused_conv1d_kernel, L=L, S=S)
    out = pl.pallas_call(
        kernel,
        out_shape=jax.ShapeDtypeStruct((grid[0], channel, block_b), x.dtype),
        grid_spec=pltpu.PrefetchScalarGridSpec(
            num_scalar_prefetch=0,
            grid=grid,
            in_specs=[
                pl.BlockSpec((input_dim, W), lambda i: (0, i)),   # x: per-step batch block
                pl.BlockSpec(mask.shape, lambda i: (0, 0)),       # resident pad mask
                pl.BlockSpec(w1.shape, lambda i: (0, 0, 0)),      # resident weights
                pl.BlockSpec(w2.shape, lambda i: (0, 0, 0)),
                pl.BlockSpec(w3.shape, lambda i: (0, 0, 0)),
                pl.BlockSpec(b_all.shape, lambda i: (0, 0)),      # resident biases
            ],
            out_specs=pl.BlockSpec((1, channel, block_b), lambda i: (i, 0, 0)),
        ),
        # Batch tiles are independent -> "parallel" lets v7x's 2 TCs split them.
        # VMEM per step is tiny (few hundred KiB), well under v7x's 64 MiB.
        compiler_params=pltpu.CompilerParams(dimension_semantics=("parallel",)),
    )(x2d, mask, w1, w2, w3, b_all)

    # (num_blocks, Cout, block_b) -> (B, Cout)
    return jnp.transpose(out, (0, 2, 1)).reshape(B, channel)


def _ref_forward(x, params):
    """Pure-JAX reference for correctness checking."""
    def conv(h, w, b):
        y = lax.conv_general_dilated(h, w, (1,), [(1, 1)],
                                     dimension_numbers=("NCH", "OIH", "NCH"))
        return jnp.maximum(y + b[None, :, None], 0.0)
    h = jnp.transpose(x, (0, 2, 1))
    h = conv(h, params["w1"], params["b1"])
    h = conv(h, params["w2"], params["b2"])
    h = conv(h, params["w3"], params["b3"])
    return jnp.max(h, axis=-1) + jnp.mean(h, axis=-1)


def _make_inputs(key, B, L, input_dim, channel, K=3):
    ks = jax.random.split(key, 7)
    x = jax.random.normal(ks[0], (B, L, input_dim), jnp.float32)
    params = {
        "w1": 0.1 * jax.random.normal(ks[1], (channel, input_dim, K), jnp.float32),
        "b1": 0.1 * jax.random.normal(ks[2], (channel,), jnp.float32),
        "w2": 0.1 * jax.random.normal(ks[3], (channel, channel, K), jnp.float32),
        "b2": 0.1 * jax.random.normal(ks[4], (channel,), jnp.float32),
        "w3": 0.1 * jax.random.normal(ks[5], (channel, channel, K), jnp.float32),
        "b3": 0.1 * jax.random.normal(ks[6], (channel,), jnp.float32),
    }
    return x, params


def _check(key, B, L, input_dim, channel, **kw):
    x, params = _make_inputs(key, B, L, input_dim, channel)
    out = jax.block_until_ready(conv1d_forward(x, params, **kw))
    ref = jax.block_until_ready(_ref_forward(x, params))
    assert out.shape == (B, channel), out.shape
    err = jnp.max(jnp.abs(out - ref))
    assert jnp.allclose(out, ref, atol=1e-4, rtol=1e-4), f"mismatch, max abs err {err}"


if __name__ == "__main__":
    key = jax.random.PRNGKey(0)
    k1, k2, k3 = jax.random.split(key, 3)
    # Primary small config (matches the module's typical shapes): grid = (1,).
    _check(k1, B=2, L=16, input_dim=8, channel=16)
    # Same config, block_b=1 -> exercises the multi-step "parallel" batch grid.
    _check(k2, B=2, L=16, input_dim=8, channel=16, block_b=1)
    # Larger segments (S=256) + auto block_b=4 -> grid=(2,), multi-step path.
    _check(k3, B=8, L=150, input_dim=8, channel=16)
    print("KERNEL_OK")
</pallas_src>

<mosaic_0001>
module attributes {stable_mosaic.version = 11 : i64} {
  func.func @_fused_conv1d_kernel(%arg0: i32, %arg1: memref<8x256xf32, #tpu.memory_space<vmem>>, %arg2: memref<1x256xf32, #tpu.memory_space<vmem>>, %arg3: memref<3x16x8xf32, #tpu.memory_space<vmem>>, %arg4: memref<3x16x16xf32, #tpu.memory_space<vmem>>, %arg5: memref<3x16x16xf32, #tpu.memory_space<vmem>>, %arg6: memref<16x3xf32, #tpu.memory_space<vmem>>, %arg7: memref<1x16x2xf32, #tpu.memory_space<vmem>>) attributes {dimension_semantics = [#tpu.dimension_semantics<parallel>], iteration_bounds = array<i64: 1>, scalar_prefetch = 0 : i64, scratch_operands = 0 : i64, tpu.core_type = #tpu.core_type<tc>, window_params = [{transform_indices = @transform_0, window_bounds = array<i64: 8, 256>}, {pipeline_mode = #tpu.pipeline_mode<synchronous>, transform_indices = @transform_1, window_bounds = array<i64: 1, 256>}, {pipeline_mode = #tpu.pipeline_mode<synchronous>, transform_indices = @transform_2, window_bounds = array<i64: 3, 16, 8>}, {pipeline_mode = #tpu.pipeline_mode<synchronous>, transform_indices = @transform_3, window_bounds = array<i64: 3, 16, 16>}, {pipeline_mode = #tpu.pipeline_mode<synchronous>, transform_indices = @transform_4, window_bounds = array<i64: 3, 16, 16>}, {pipeline_mode = #tpu.pipeline_mode<synchronous>, transform_indices = @transform_5, window_bounds = array<i64: 16, 3>}, {transform_indices = @transform_6, window_bounds = array<i64: 1, 16, 2>}]} {
    %c0 = arith.constant 0 : index
    %c0_0 = arith.constant 0 : index
    %0 = vector.load %arg2[%c0, %c0_0] : memref<1x256xf32, #tpu.memory_space<vmem>>, vector<1x256xf32>
    %c0_1 = arith.constant 0 : index
    %c0_2 = arith.constant 0 : index
    %1 = vector.load %arg6[%c0_1, %c0_2] : memref<16x3xf32, #tpu.memory_space<vmem>>, vector<16x3xf32>
    %c0_3 = arith.constant 0 : index
    %c0_4 = arith.constant 0 : index
    %2 = vector.load %arg1[%c0_3, %c0_4] : memref<8x256xf32, #tpu.memory_space<vmem>>, vector<8x256xf32>
    %cst = arith.constant 0.000000e+00 : f32
    %3 = vector.broadcast %cst : f32 to vector<8x1xf32>
    %4 = vector.extract_strided_slice %2 {offsets = [0, 0], sizes = [8, 255], strides = [1, 1]} : vector<8x256xf32> to vector<8x255xf32>
    %5 = tpu.concatenate %3, %4 in 1 : vector<8x1xf32>, vector<8x255xf32> -> vector<8x256xf32>
    %6 = vector.extract_strided_slice %2 {offsets = [0, 1], sizes = [8, 255], strides = [1, 1]} : vector<8x256xf32> to vector<8x255xf32>
    %7 = tpu.concatenate %6, %3 in 1 : vector<8x255xf32>, vector<8x1xf32> -> vector<8x256xf32>
    %c0_5 = arith.constant 0 : index
    %c0_6 = arith.constant 0 : index
    %c0_7 = arith.constant 0 : index
    %8 = vector.load %arg3[%c0_5, %c0_6, %c0_7] : memref<3x16x8xf32, #tpu.memory_space<vmem>>, vector<1x16x8xf32>
    %9 = vector.shape_cast %8 : vector<1x16x8xf32> to vector<16x8xf32>
    %cst_8 = arith.constant dense<0.000000e+00> : vector<16x256xf32>
    %10 = tpu.matmul %9, %5, %cst_8 {dimension_numbers = #tpu.dot_dimension_numbers<[1], [0], [0], [1], [0, 0, 1, 1], [], []>} : vector<16x8xf32>, vector<8x256xf32>, vector<16x256xf32> -> vector<16x256xf32>
    %c1 = arith.constant 1 : index
    %c0_9 = arith.constant 0 : index
    %c0_10 = arith.constant 0 : index
    %11 = vector.load %arg3[%c1, %c0_9, %c0_10] : memref<3x16x8xf32, #tpu.memory_space<vmem>>, vector<1x16x8xf32>
    %12 = vector.shape_cast %11 : vector<1x16x8xf32> to vector<16x8xf32>
    %cst_11 = arith.constant dense<0.000000e+00> : vector<16x256xf32>
    %13 = tpu.matmul %12, %2, %cst_11 {dimension_numbers = #tpu.dot_dimension_numbers<[1], [0], [0], [1], [0, 0, 1, 1], [], []>} : vector<16x8xf32>, vector<8x256xf32>, vector<16x256xf32> -> vector<16x256xf32>
    %14 = arith.addf %10, %13 : vector<16x256xf32>
    %c2 = arith.constant 2 : index
    %c0_12 = arith.constant 0 : index
    %c0_13 = arith.constant 0 : index
    %15 = vector.load %arg3[%c2, %c0_12, %c0_13] : memref<3x16x8xf32, #tpu.memory_space<vmem>>, vector<1x16x8xf32>
    %16 = vector.shape_cast %15 : vector<1x16x8xf32> to vector<16x8xf32>
    %cst_14 = arith.constant dense<0.000000e+00> : vector<16x256xf32>
    %17 = tpu.matmul %16, %7, %cst_14 {dimension_numbers = #tpu.dot_dimension_numbers<[1], [0], [0], [1], [0, 0, 1, 1], [], []>} : vector<16x8xf32>, vector<8x256xf32>, vector<16x256xf32> -> vector<16x256xf32>
    %18 = arith.addf %14, %17 : vector<16x256xf32>
    %19 = vector.extract_strided_slice %1 {offsets = [0, 0], sizes = [16, 1], strides = [1, 1]} : vector<16x3xf32> to vector<16x1xf32>
    %20 = vector.broadcast %19 : vector<16x1xf32> to vector<16x256xf32>
    %21 = arith.addf %18, %20 : vector<16x256xf32>
    %cst_15 = arith.constant 0.000000e+00 : f32
    %22 = vector.broadcast %cst_15 : f32 to vector<16x256xf32>
    %23 = arith.maximumf %21, %22 : vector<16x256xf32>
    %24 = vector.broadcast %0 : vector<1x256xf32> to vector<16x256xf32>
    %25 = arith.mulf %23, %24 : vector<16x256xf32>
    %cst_16 = arith.constant 0.000000e+00 : f32
    %26 = vector.broadcast %cst_16 : f32 to vector<16x1xf32>
    %27 = vector.extract_strided_slice %25 {offsets = [0, 0], sizes = [16, 255], strides = [1, 1]} : vector<16x256xf32> to vector<16x255xf32>
    %28 = tpu.concatenate %26, %27 in 1 : vector<16x1xf32>, vector<16x255xf32> -> vector<16x256xf32>
    %29 = vector.extract_strided_slice %25 {offsets = [0, 1], sizes = [16, 255], strides = [1, 1]} : vector<16x256xf32> to vector<16x255xf32>
    %30 = tpu.concatenate %29, %26 in 1 : vector<16x255xf32>, vector<16x1xf32> -> vector<16x256xf32>
    %c0_17 = arith.constant 0 : index
    %c0_18 = arith.constant 0 : index
    %c0_19 = arith.constant 0 : index
    %31 = vector.load %arg4[%c0_17, %c0_18, %c0_19] : memref<3x16x16xf32, #tpu.memory_space<vmem>>, vector<1x16x16xf32>
    %32 = vector.shape_cast %31 : vector<1x16x16xf32> to vector<16x16xf32>
    %cst_20 = arith.constant dense<0.000000e+00> : vector<16x256xf32>
    %33 = tpu.matmul %32, %28, %cst_20 {dimension_numbers = #tpu.dot_dimension_numbers<[1], [0], [0], [1], [0, 0, 1, 1], [], []>} : vector<16x16xf32>, vector<16x256xf32>, vector<16x256xf32> -> vector<16x256xf32>
    %c1_21 = arith.constant 1 : index
    %c0_22 = arith.constant 0 : index
    %c0_23 = arith.constant 0 : index
    %34 = vector.load %arg4[%c1_21, %c0_22, %c0_23] : memref<3x16x16xf32, #tpu.memory_space<vmem>>, vector<1x16x16xf32>
    %35 = vector.shape_cast %34 : vector<1x16x16xf32> to vector<16x16xf32>
    %cst_24 = arith.constant dense<0.000000e+00> : vector<16x256xf32>
    %36 = tpu.matmul %35, %25, %cst_24 {dimension_numbers = #tpu.dot_dimension_numbers<[1], [0], [0], [1], [0, 0, 1, 1], [], []>} : vector<16x16xf32>, vector<16x256xf32>, vector<16x256xf32> -> vector<16x256xf32>
    %37 = arith.addf %33, %36 : vector<16x256xf32>
    %c2_25 = arith.constant 2 : index
    %c0_26 = arith.constant 0 : index
    %c0_27 = arith.constant 0 : index
    %38 = vector.load %arg4[%c2_25, %c0_26, %c0_27] : memref<3x16x16xf32, #tpu.memory_space<vmem>>, vector<1x16x16xf32>
    %39 = vector.shape_cast %38 : vector<1x16x16xf32> to vector<16x16xf32>
    %cst_28 = arith.constant dense<0.000000e+00> : vector<16x256xf32>
    %40 = tpu.matmul %39, %30, %cst_28 {dimension_numbers = #tpu.dot_dimension_numbers<[1], [0], [0], [1], [0, 0, 1, 1], [], []>} : vector<16x16xf32>, vector<16x256xf32>, vector<16x256xf32> -> vector<16x256xf32>
    %41 = arith.addf %37, %40 : vector<16x256xf32>
    %42 = vector.extract_strided_slice %1 {offsets = [0, 1], sizes = [16, 1], strides = [1, 1]} : vector<16x3xf32> to vector<16x1xf32>
    %43 = vector.broadcast %42 : vector<16x1xf32> to vector<16x256xf32>
    %44 = arith.addf %41, %43 : vector<16x256xf32>
    %cst_29 = arith.constant 0.000000e+00 : f32
    %45 = vector.broadcast %cst_29 : f32 to vector<16x256xf32>
    %46 = arith.maximumf %44, %45 : vector<16x256xf32>
    %47 = vector.broadcast %0 : vector<1x256xf32> to vector<16x256xf32>
    %48 = arith.mulf %46, %47 : vector<16x256xf32>
    %cst_30 = arith.constant 0.000000e+00 : f32
    %49 = vector.broadcast %cst_30 : f32 to vector<16x1xf32>
    %50 = vector.extract_strided_slice %48 {offsets = [0, 0], sizes = [16, 255], strides = [1, 1]} : vector<16x256xf32> to vector<16x255xf32>
    %51 = tpu.concatenate %49, %50 in 1 : vector<16x1xf32>, vector<16x255xf32> -> vector<16x256xf32>
    %52 = vector.extract_strided_slice %48 {offsets = [0, 1], sizes = [16, 255], strides = [1, 1]} : vector<16x256xf32> to vector<16x255xf32>
    %53 = tpu.concatenate %52, %49 in 1 : vector<16x255xf32>, vector<16x1xf32> -> vector<16x256xf32>
    %c0_31 = arith.constant 0 : index
    %c0_32 = arith.constant 0 : index
    %c0_33 = arith.constant 0 : index
    %54 = vector.load %arg5[%c0_31, %c0_32, %c0_33] : memref<3x16x16xf32, #tpu.memory_space<vmem>>, vector<1x16x16xf32>
    %55 = vector.shape_cast %54 : vector<1x16x16xf32> to vector<16x16xf32>
    %cst_34 = arith.constant dense<0.000000e+00> : vector<16x256xf32>
    %56 = tpu.matmul %55, %51, %cst_34 {dimension_numbers = #tpu.dot_dimension_numbers<[1], [0], [0], [1], [0, 0, 1, 1], [], []>} : vector<16x16xf32>, vector<16x256xf32>, vector<16x256xf32> -> vector<16x256xf32>
    %c1_35 = arith.constant 1 : index
    %c0_36 = arith.constant 0 : index
    %c0_37 = arith.constant 0 : index
    %57 = vector.load %arg5[%c1_35, %c0_36, %c0_37] : memref<3x16x16xf32, #tpu.memory_space<vmem>>, vector<1x16x16xf32>
    %58 = vector.shape_cast %57 : vector<1x16x16xf32> to vector<16x16xf32>
    %cst_38 = arith.constant dense<0.000000e+00> : vector<16x256xf32>
    %59 = tpu.matmul %58, %48, %cst_38 {dimension_numbers = #tpu.dot_dimension_numbers<[1], [0], [0], [1], [0, 0, 1, 1], [], []>} : vector<16x16xf32>, vector<16x256xf32>, vector<16x256xf32> -> vector<16x256xf32>
    %60 = arith.addf %56, %59 : vector<16x256xf32>
    %c2_39 = arith.constant 2 : index
    %c0_40 = arith.constant 0 : index
    %c0_41 = arith.constant 0 : index
    %61 = vector.load %arg5[%c2_39, %c0_40, %c0_41] : memref<3x16x16xf32, #tpu.memory_space<vmem>>, vector<1x16x16xf32>
    %62 = vector.shape_cast %61 : vector<1x16x16xf32> to vector<16x16xf32>
    %cst_42 = arith.constant dense<0.000000e+00> : vector<16x256xf32>
    %63 = tpu.matmul %62, %53, %cst_42 {dimension_numbers = #tpu.dot_dimension_numbers<[1], [0], [0], [1], [0, 0, 1, 1], [], []>} : vector<16x16xf32>, vector<16x256xf32>, vector<16x256xf32> -> vector<16x256xf32>
    %64 = arith.addf %60, %63 : vector<16x256xf32>
    %65 = vector.extract_strided_slice %1 {offsets = [0, 2], sizes = [16, 1], strides = [1, 1]} : vector<16x3xf32> to vector<16x1xf32>
    %66 = vector.broadcast %65 : vector<16x1xf32> to vector<16x256xf32>
    %67 = arith.addf %64, %66 : vector<16x256xf32>
    %cst_43 = arith.constant 0.000000e+00 : f32
    %68 = vector.broadcast %cst_43 : f32 to vector<16x256xf32>
    %69 = arith.maximumf %67, %68 : vector<16x256xf32>
    %70 = vector.broadcast %0 : vector<1x256xf32> to vector<16x256xf32>
    %71 = arith.mulf %69, %70 : vector<16x256xf32>
    %72 = vector.extract_strided_slice %71 {offsets = [0, 0], sizes = [16, 128], strides = [1, 1]} : vector<16x256xf32> to vector<16x128xf32>
    %cst_44 = arith.constant dense<0xFF800000> : vector<16xf32>
    %73 = vector.multi_reduction <maximumf>, %72, %cst_44 [1] : vector<16x128xf32> to vector<16xf32>
    %74 = vector.shape_cast %73 : vector<16xf32> to vector<16x1xf32>
    %cst_45 = arith.constant dense<0.000000e+00> : vector<16xf32>
    %75 = vector.multi_reduction <add>, %72, %cst_45 [1] : vector<16x128xf32> to vector<16xf32>
    %76 = vector.shape_cast %75 : vector<16xf32> to vector<16x1xf32>
    %cst_46 = arith.constant 6.250000e-02 : f32
    %77 = vector.broadcast %cst_46 : f32 to vector<16x1xf32>
    %78 = arith.mulf %76, %77 : vector<16x1xf32>
    %79 = arith.addf %74, %78 : vector<16x1xf32>
    %80 = vector.extract_strided_slice %71 {offsets = [0, 128], sizes = [16, 128], strides = [1, 1]} : vector<16x256xf32> to vector<16x128xf32>
    %cst_47 = arith.constant dense<0xFF800000> : vector<16xf32>
    %81 = vector.multi_reduction <maximumf>, %80, %cst_47 [1] : vector<16x128xf32> to vector<16xf32>
    %82 = vector.shape_cast %81 : vector<16xf32> to vector<16x1xf32>
    %cst_48 = arith.constant dense<0.000000e+00> : vector<16xf32>
    %83 = vector.multi_reduction <add>, %80, %cst_48 [1] : vector<16x128xf32> to vector<16xf32>
    %84 = vector.shape_cast %83 : vector<16xf32> to vector<16x1xf32>
    %cst_49 = arith.constant 6.250000e-02 : f32
    %85 = vector.broadcast %cst_49 : f32 to vector<16x1xf32>
    %86 = arith.mulf %84, %85 : vector<16x1xf32>
    %87 = arith.addf %82, %86 : vector<16x1xf32>
    %88 = tpu.concatenate %79, %87 in 1 : vector<16x1xf32>, vector<16x1xf32> -> vector<16x2xf32>
    %c0_50 = arith.constant 0 : index
    %c0_51 = arith.constant 0 : index
    %c0_52 = arith.constant 0 : index
    %89 = vector.load %arg7[%c0_50, %c0_51, %c0_52] : memref<1x16x2xf32, #tpu.memory_space<vmem>>, vector<1x16x2xf32>
    %90 = vector.shape_cast %89 : vector<1x16x2xf32> to vector<16x2xf32>
    %91 = vector.shape_cast %88 : vector<16x2xf32> to vector<1x16x2xf32>
    tpu.vector_store %arg7[%c0_50, %c0_51, %c0_52], %91 {strides = array<i32>} : memref<1x16x2xf32, #tpu.memory_space<vmem>>, vector<1x16x2xf32>,
    return
  }
  func.func @transform_0(%arg0: i32) -> (i32, i32) {
    %c0_i32 = arith.constant 0 : i32
    %c0_i32_0 = arith.constant 0 : i32
    return %c0_i32, %arg0 : i32, i32
  }
  func.func @transform_1(%arg0: i32) -> (i32, i32) {
    %c0_i32 = arith.constant 0 : i32
    %c0_i32_0 = arith.constant 0 : i32
    %c0_i32_1 = arith.constant 0 : i32
    return %c0_i32, %c0_i32_0 : i32, i32
  }
  func.func @transform_2(%arg0: i32) -> (i32, i32, i32) {
    %c0_i32 = arith.constant 0 : i32
    %c0_i32_0 = arith.constant 0 : i32
    %c0_i32_1 = arith.constant 0 : i32
    %c0_i32_2 = arith.constant 0 : i32
    return %c0_i32, %c0_i32_0, %c0_i32_1 : i32, i32, i32
  }
  func.func @transform_3(%arg0: i32) -> (i32, i32, i32) {
    %c0_i32 = arith.constant 0 : i32
    %c0_i32_0 = arith.constant 0 : i32
    %c0_i32_1 = arith.constant 0 : i32
    %c0_i32_2 = arith.constant 0 : i32
    return %c0_i32, %c0_i32_0, %c0_i32_1 : i32, i32, i32
  }
  func.func @transform_4(%arg0: i32) -> (i32, i32, i32) {
    %c0_i32 = arith.constant 0 : i32
    %c0_i32_0 = arith.constant 0 : i32
    %c0_i32_1 = arith.constant 0 : i32
    %c0_i32_2 = arith.constant 0 : i32
    return %c0_i32, %c0_i32_0, %c0_i32_1 : i32, i32, i32
  }
  func.func @transform_5(%arg0: i32) -> (i32, i32) {
    %c0_i32 = arith.constant 0 : i32
    %c0_i32_0 = arith.constant 0 : i32
    %c0_i32_1 = arith.constant 0 : i32
    return %c0_i32, %c0_i32_0 : i32, i32
  }
  func.func @transform_6(%arg0: i32) -> (i32, i32, i32) {
    %c0_i32 = arith.constant 0 : i32
    %c0_i32_0 = arith.constant 0 : i32
    %c0_i32_1 = arith.constant 0 : i32
    return %arg0, %c0_i32, %c0_i32_0 : i32, i32, i32
  }
}

</mosaic_0001>

<bundles_post_ra>
// kernel: tpu_custom_call.1
= control target key start
LH: loop header
LB: loop body
LE: loop exit
PB: predicated region body
PF: predicated region fallthrough
CT: control target
= control target key end

     0   :  { %11 = vsyncpa [#allocation3], 0  ;;  %s1200_s21 = smov [#allocation2]   ;;  %s1442_s0 = inlined_call_operand.hbm [shape: f32[8,256], index: 0, kind: input, shape index: {}]   ;;  %s1443_s1 = inlined_call_operand.vmem [shape: f32[1,256], index: 1, kind: input, shape index: {}]   ;;  %s1444_s2 = inlined_call_operand.vmem [shape: f32[3,16,8], index: 2, kind: input, shape index: {}]   ;;  %s1445_s3 = inlined_call_operand.vmem [shape: f32[3,16,16], index: 3, kind: input, shape index: {}]   ;;  %s1446_s4 = inlined_call_operand.vmem [shape: f32[3,16,16], index: 4, kind: input, shape index: {}]   ;;  %s1447_s5 = inlined_call_operand.vmem [shape: f32[16,3], index: 5, kind: input, shape index: {}]   ;;  %s1448_s6 = inlined_call_operand.vmem [shape: f32[1,16,2], index: 6, kind: output, shape index: {}]  }
   0x1   :  { %s18_s22 = sshll.u32 %s1200_s21, 4  ;;  %s1176_s25 = scalar_lea.hbm %s1442_s0, 256  ;;  %s19_s22 = int_to_ptr.vmem [resolvable:$true] %s18_s22 }
   0x2   :  { %p1177_p0 = scmp.ne.s32.totalorder %s1442_s0, %s1176_s25  ;;  %p1180_p1 = scmp.lt.u32.totalorder %s1176_s25, %s1442_s0 }
   0x4   :  { %p1182_p2 = pnand %p1180_p1, %p1177_p0 }
   0x6   :  { %1185 = shalt.err (!%p1182_p2)
}
   0x7   :  { %s1186_s30 = scalar_lea.vmem %s19_s22, 256  ;;  %p1191_p4 = scmp.lt.s32.totalorder %s19_s22, %s19_s22 }
   0x8   :  { %p1187_p3 = scmp.ne.s32.totalorder %s19_s22, %s1186_s30  ;;  %p1192_p5 = scmp.lt.s32.totalorder %s1186_s30, %s1186_s30 }
   0xa   :  { %p1193_p6 = por %p1192_p5, %p1191_p4 }
   0xc   :  { %p1194_p7 = pnand %p1193_p6, %p1187_p3 }
   0xe   :  { %1197 = shalt.err (!%p1194_p7)
}
   0xf   :  { %21 = dma.hbm_to_vmem [thread:$0]  %s1442_s0, 256, %s19_s22, [#allocation3]  }
  0x10   :  { %1198 = dma.done.wait [#allocation3], 256  }
  0x11   :  { %1199 = vsyncadd [#allocation3], 4294967040  ;;  %v1201_v0 = vmov 0.0   ;;  %v38_v1 = vld [vmem:[#allocation2] sm:$0xff]  ;;  %s1202_s9 = smov 1   ;;  %s1203_s10 = smov 127   ;;  %v341_v21 = vlaneseq }
  0x12   :  { %136 = vmatprep.mubr.f32.mxu1 %v1201_v0  ;;  %219 = vmatprep.mubr.f32.mxu0 %v1201_v0  ;;  %v39_v2 = vld [vmem:[#allocation2 + $0x8] sm:$0xff]  ;;  %v1024_v3 = vld [vmem:[%s1444_s2 + $0x10] sm:$0xff]  ;;  %vm65_vm0 = vcmask 64512   ;;  %v1025_v4 = vld [vmem:[%s1444_s2 + $0x18] sm:$0xff]  ;;  %v1204_v6 = vmov 0   ;;  %vm46_vm1 = vcmask 7168  }
  0x13   :  { %42 = vrot.lane.b32.xlu0 %v38_v1, %s1202_s9  ;;  %51 = vrot.lane.b32.xlu1 %v38_v1, %s1203_s10  ;;  %v1271_v5 = vld [vmem:[%s1447_s5] sm:$0xff]  ;;  %v1277_v7 = vld [vmem:[%s1447_s5 + $0x8] sm:$0xff]  ;;  %vm55_vm2 = vcmask 1039360   ;;  %vm1283_vm3 = vmneg %vm46_vm1  ;;  %v342_v24 = vshrl.u32 %v341_v21, 7  ;;  %vm396_vm4 = vcmask 130048   ;;  %v1205_v58 = vmov 1  }
  0x14   :  { %72 = vmatprep.subr.mxu1 %v39_v2  ;;  %1130 = vset.pattern.permute.xlu0 %v1204_v6  ;;  %v60_v14 = vld [vmem:[%s1444_s2] sm:$0xff]  ;;  %v61_v16 = vld [vmem:[%s1444_s2 + $0x8] sm:$0xff]  ;;  %v1037_v56 = vld [vmem:[%s1445_s3 + $0x10] sm:$0xff]  ;;  %vm1016_vm7 = vcmask 15360  }
  0x15   :  { %73 = vmatpush1.msra.mxu1 %v38_v1  ;;  %1131 = vset.pattern.permute.xlu1 %v1204_v6  ;;  %v1032_v17 = vld [vmem:[%s1444_s2 + $0x20] sm:$0xff]  ;;  %v1033_v18 = vld [vmem:[%s1444_s2 + $0x28] sm:$0xff]  ;;  %v343_v25 = vsub.s32 0, %v342_v24  ;;  %v347_v27 = vsub.s32 1, %v342_v24  ;;  %v1038_v57 = vld [vmem:[%s1445_s3 + $0x18] sm:$0xff] }
  0x16   :  { %1026 = vmatmul.mubr.msk.f32.vlgmr.msra.gmra.mrb[0].mxu1 %vm65_vm0, %v1024_v3  ;;  %v35_v29 = vld [vmem:[%s1443_s1] sm:$0x3]  ;;  %vm1076_vm5 = vmpackc.low %vm1283_vm3, %vm1283_vm3  ;;  %v392_v21 = vld [vmem:[%s1445_s3 + $0x8] sm:$0xff] }
  0x17   :  { %44 = vrot.lane.b32.xlu0 %v39_v2, %s1202_s9  ;;  %53 = vrot.lane.b32.xlu1 %v39_v2, %s1203_s10  ;;  %v1317_v34 = vrot.slane %v35_v29, %v343_v25  ;;  %v1319_v36 = vrot.slane %v35_v29, %v347_v27  ;;  %vm1348_vm6 = vmpackc.low %vm55_vm2, %vm55_vm2  ;;  %v1063_v12 = vld [vmem:[%s1446_s4 + $0x20] sm:$0xff] }
  0x18   :  { %142 = vmatprep.mubr.f32.mxu1 %v1201_v0 }
  0x1a   :  { %1027 = vmatmul.mubr.msk.f32.gmra.mrb[2].mxu1 %vm65_vm0, %v1025_v4 }
  0x1b   :  { %225 = vmatprep.mubr.f32.mxu1 %v1201_v0  ;;  %324 = vperm.xlu0 %1130, %v1271_v5  }
  0x1c   :  { %329 = vperm.xlu1 %1131, %v1277_v7  }
  0x1f   :  { %1153 = vset.pattern.permute.xlu0 %v1205_v58 }
  0x20   :  { %1152 = vset.pattern.permute.xlu1 %v1205_v58 }
  0x85   :  { %v43_v8 = vpop.permute.xlu0 %42  ;;  %v52_v9 = vpop.permute.xlu1 %51 }
  0x89   :  { %v45_v10 = vpop.permute.xlu0 %44  ;;  %v54_v11 = vpop.permute.xlu1 %53 }
  0x8a   :  { %v47_v13 = vsel %vm46_vm1, %v43_v8, %v45_v10  ;;  %v56_v15 = vsel %vm55_vm2, %v52_v9, %v54_v11 }
  0x8b   :  { %155 = vmatprep.subr.mxu0 %v47_v13  ;;  %1097 = vmatprep.subr.mxu1 %v47_v13 }
  0x8c   :  { %1029 = vmatpush1.msk.msra.mxu0 %vm1283_vm3, %v43_v8  ;;  %1098 = vmatpush1.msk.msra.mxu1 %vm1283_vm3, %v43_v8 }
  0x8d   :  { %1030 = vmatmul.mubr.msk.f32.vlgmr.msra.gmra.mrb[0].mxu0 %vm65_vm0, %v60_v14  ;;  %1034 = vmatprep.subr.msk.mxu0 %vm55_vm2, %v54_v11 }
  0x8e   :  { %242 = vmatpush1.msra.mxu0 %v56_v15  ;;  %1031 = vmatmul.mubr.msk.f32.vlgmr.msra.gmra.mrb[2].mxu1 %vm65_vm0, %v61_v16 }
  0x8f   :  { %305 = vmatprep.mubr.f32.mxu0 %v1201_v0  ;;  %467 = vmatprep.mubr.f32.mxu1 %v1201_v0 }
  0x95   :  { %1035 = vmatmul.mubr.msk.f32.vlgmr.msra.gmra.mrb[0].mxu0 %vm65_vm0, %v1032_v17 }
  0x96   :  { %311 = vmatprep.mubr.f32.mxu0 %v1201_v0 }
  0x99   :  { %1036 = vmatmul.mubr.msk.f32.gmra.mrb[2].mxu0 %vm65_vm0, %v1033_v18 }
  0x9a   :  { %784 = vmatprep.mubr.f32.mxu0 %v1201_v0  ;;  %v325_v28 = vpop.permute.xlu0 %324 }
  0x9b   :  { %v330_v38 = vpop.permute.xlu1 %329 }
  0xe9   :  { %v138_v19 = vpop.f32.mrb[0].mxu1 }
  0xea   :  { %v140_v20 = vpop.f32.mrb[1].mxu1 }
 0x161   :  { %v227_v22 = vpop.f32.mrb[2].mxu1 }
 0x162   :  { %v229_v23 = vpop.f32.mrb[3].mxu1 }
 0x168   :  { %v307_v26 = vpop.f32.mrb[0].mxu0 }
 0x169   :  { %v1099_v30 = vadd.f32 %v307_v26, %v138_v19  ;;  %v309_v31 = vpop.f32.mrb[1].mxu0  ;;  %v391_v19 = vld [vmem:[%s1445_s3] sm:$0xff] }
 0x16a   :  { %v1100_v32 = vadd.f32 %v309_v31, %v140_v20 }
 0x16b   :  { %v332_v33 = vadd.f32 %v1099_v30, %v325_v28 }
 0x16c   :  { %v333_v35 = vadd.f32 %v1100_v32, %v325_v28  ;;  %v313_v37 = vpop.f32.mrb[2].mxu0 }
 0x16d   :  { %v336_v39 = vmax.f32 %v332_v33, 0.0  ;;  %v1101_v40 = vadd.f32 %v313_v37, %v227_v22  ;;  %v315_v41 = vpop.f32.mrb[3].mxu0  ;;  %v1047_v22 = vld [vmem:[%s1445_s3 + $0x20] sm:$0xff] }
 0x16e   :  { %v337_v42 = vmax.f32 %v333_v35, 0.0  ;;  %v1102_v43 = vadd.f32 %v315_v41, %v229_v23  ;;  %v1048_v23 = vld [vmem:[%s1445_s3 + $0x28] sm:$0xff] }
 0x16f   :  { %v351_v44 = vmul.f32 %v1317_v34, %v336_v39  ;;  %v334_v45 = vadd.f32 %v1101_v40, %v330_v38 }
 0x170   :  { %v352_v46 = vmul.f32 %v1319_v36, %v337_v42  ;;  %v335_v47 = vadd.f32 %v1102_v43, %v330_v38 }
 0x171   :  { %v338_v48 = vmax.f32 %v334_v45, 0.0 }
 0x172   :  { %v339_v49 = vmax.f32 %v335_v47, 0.0  ;;  %v1132_v50 = vpack.i.bf16 %v352_v46, %v351_v44 }
 0x173   :  { %v353_v51 = vmul.f32 %v1317_v34, %v338_v48  ;;  %v1053_v48 = vld [vmem:[%s1446_s4 + $0x10] sm:$0xff] }
 0x174   :  { %v354_v52 = vmul.f32 %v1319_v36, %v339_v49  ;;  %1133 = vrot.lane.b32.xlu1 %v1132_v50, %s1202_s9  ;;  %v1054_v49 = vld [vmem:[%s1446_s4 + $0x18] sm:$0xff] }
 0x175   :  { %v1071_v53 = vpack.c.bf16 %v353_v51, %v351_v44 }
 0x176   :  { %v1069_v54 = vpack.c.bf16 %v354_v52, %v352_v46  ;;  %v1137_v55 = vpack.i.bf16 %v354_v52, %v353_v51 }
 0x178   :  { %1070 = vmatprep.subr.bf16.mxu1 %v1069_v54  ;;  %1138 = vrot.lane.b32.xlu0 %v1137_v55, %s1202_s9 }
 0x179   :  { %1143 = vrot.lane.b32.xlu1 %v1132_v50, %s1203_s10  ;;  %1072 = vmatpush1.bf16.msra.mxu1 %v1071_v53  ;;  %v1206_v50 = vmov 2  }
 0x17c   :  { %1148 = vrot.lane.b32.xlu0 %v1137_v55, %s1203_s10  ;;  %1039 = vmatmul.mubr.msk.f32.vlgmr.msra.gmra.mrb[4].mxu1 %vm396_vm4, %v1037_v56 }
 0x17d   :  { %473 = vmatprep.mubr.f32.mxu1 %v1201_v0  ;;  %654 = vperm.xlu1 %1152, %v1271_v5  }
 0x180   :  { %1040 = vmatmul.mubr.msk.f32.gmra.mrb[6].mxu1 %vm396_vm4, %v1038_v57  ;;  %658 = vperm.xlu0 %1153, %v1277_v7  }
 0x181   :  { %550 = vmatprep.mubr.f32.mxu1 %v1201_v0  ;;  %1175 = vset.pattern.permute.xlu1 %v1206_v50 }
 0x184   :  { %1174 = vset.pattern.permute.xlu0 %v1206_v50 }
 0x1e6   :  { %v1134_v59 = vpop.permute.xlu1 %1133 }
 0x1e7   :  { %v1136_v60 = vunpack.i.h.bf16 %v1134_v59  ;;  %v1135_v61 = vunpack.i.l.bf16 %v1134_v59 }
 0x1e9   :  { %v367_v6 = vsel %vm46_vm1, %v1135_v61, %v1136_v60 }
 0x1ea   :  { %v1139_v62 = vpop.permute.xlu0 %1138 }
 0x1eb   :  { %v1141_v63 = vunpack.i.h.bf16 %v1139_v62  ;;  %v1140_v1 = vunpack.i.l.bf16 %v1139_v62  ;;  %v1144_v2 = vpop.permute.xlu1 %1143 }
 0x1ec   :  { %v1146_v3 = vunpack.i.h.bf16 %v1144_v2  ;;  %v1145_v4 = vunpack.i.l.bf16 %v1144_v2 }
 0x1ed   :  { %v368_v8 = vsel %vm46_vm1, %v1140_v1, %v1141_v63  ;;  %v1075_v11 = vpack.c.bf16 %v1140_v1, %v1135_v61 }
 0x1ee   :  { %v1149_v9 = vpop.permute.xlu0 %1148  ;;  %v1073_v10 = vpack.c.bf16 %v368_v8, %v367_v6  ;;  %v383_v16 = vsel %vm55_vm2, %v1145_v4, %v1146_v3  ;;  %v709_v6 = vld [vmem:[%s1446_s4] sm:$0xff] }
 0x1ef   :  { %v1151_v13 = vunpack.i.h.bf16 %v1149_v9  ;;  %v1150_v14 = vunpack.i.l.bf16 %v1149_v9  ;;  %v710_v9 = vld [vmem:[%s1446_s4 + $0x8] sm:$0xff] }
 0x1f0   :  { %1074 = vmatprep.subr.bf16.mxu1 %v1073_v10  ;;  %v1064_v10 = vld [vmem:[%s1446_s4 + $0x28] sm:$0xff] }
 0x1f1   :  { %v384_v17 = vsel %vm55_vm2, %v1150_v14, %v1151_v13  ;;  %v1078_v18 = vpack.c.bf16 %v1151_v13, %v1146_v3  ;;  %1077 = vmatpush1.bf16.msk.msra.mxu1 %vm1076_vm5, %v1075_v11 }
 0x1f2   :  { %v1081_v20 = vpack.c.bf16 %v384_v17, %v383_v16 }
 0x1f3   :  { %1080 = vmatprep.subr.msk.bf16.mxu1 %vm1348_vm6, %v1078_v18 }
 0x1f4   :  { %1045 = vmatmul.mubr.msk.f32.vlgmr.msra.gmra.mrb[4].mxu1 %vm396_vm4, %v391_v19 }
 0x1f5   :  { %1082 = vmatpush1.bf16.msra.mxu1 %v1081_v20  ;;  %556 = vmatprep.mubr.f32.mxu1 %v1201_v0 }
 0x1f8   :  { %1046 = vmatmul.mubr.msk.f32.gmra.mrb[6].mxu1 %vm396_vm4, %v392_v21 }
 0x1f9   :  { %636 = vmatprep.mubr.f32.mxu1 %v1201_v0 }
 0x1fc   :  { %1051 = vmatmul.mubr.msk.f32.vlgmr.msra.gmra.mrb[4].mxu1 %vm396_vm4, %v1047_v22  ;;  %v655_v24 = vpop.permute.xlu1 %654 }
 0x1fd   :  { %642 = vmatprep.mubr.f32.mxu1 %v1201_v0 }
 0x1ff   :  { %v659_v29 = vpop.permute.xlu0 %658 }
 0x200   :  { %1052 = vmatmul.mubr.msk.f32.gmra.mrb[6].mxu1 %vm396_vm4, %v1048_v23 }
 0x2cf   :  { %v638_v25 = vpop.f32.mrb[4].mxu1 }
 0x2d0   :  { %v661_v26 = vadd.f32 %v655_v24, %v638_v25  ;;  %v640_v27 = vpop.f32.mrb[5].mxu1 }
 0x2d1   :  { %v662_v28 = vadd.f32 %v655_v24, %v640_v27 }
 0x2d2   :  { %v665_v30 = vmax.f32 %v661_v26, 0.0 }
 0x2d3   :  { %v666_v31 = vmax.f32 %v662_v28, 0.0  ;;  %v644_v32 = vpop.f32.mrb[6].mxu1 }
 0x2d4   :  { %v669_v33 = vmul.f32 %v665_v30, %v1317_v34  ;;  %v663_v35 = vadd.f32 %v659_v29, %v644_v32  ;;  %v646_v37 = vpop.f32.mrb[7].mxu1 }
 0x2d5   :  { %v670_v38 = vmul.f32 %v666_v31, %v1319_v36  ;;  %v664_v39 = vadd.f32 %v659_v29, %v646_v37 }
 0x2d6   :  { %v667_v40 = vmax.f32 %v663_v35, 0.0 }
 0x2d7   :  { %v668_v41 = vmax.f32 %v664_v39, 0.0  ;;  %v1164_v42 = vpack.i.bf16 %v670_v38, %v669_v33 }
 0x2d8   :  { %v671_v43 = vmul.f32 %v667_v40, %v1317_v34 }
 0x2d9   :  { %v672_v44 = vmul.f32 %v668_v41, %v1319_v36  ;;  %1165 = vrot.lane.b32.xlu0 %v1164_v42, %s1203_s10  ;;  %1155 = vrot.lane.b32.xlu1 %v1164_v42, %s1202_s9 }
 0x2da   :  { %v1085_v45 = vpack.c.bf16 %v671_v43, %v669_v33 }
 0x2db   :  { %v1159_v46 = vpack.i.bf16 %v672_v44, %v671_v43  ;;  %v1083_v47 = vpack.c.bf16 %v672_v44, %v670_v38 }
 0x2dd   :  { %1160 = vrot.lane.b32.xlu1 %v1159_v46, %s1202_s9  ;;  %1084 = vmatprep.subr.bf16.mxu0 %v1083_v47 }
 0x2de   :  { %1086 = vmatpush1.bf16.msra.mxu0 %v1085_v45  ;;  %971 = vperm.xlu0 %1174, %v1271_v5  }
 0x2e1   :  { %1170 = vrot.lane.b32.xlu1 %v1159_v46, %s1203_s10  ;;  %1055 = vmatmul.mubr.msk.f32.vlgmr.msra.gmra.mrb[4].mxu0 %vm396_vm4, %v1053_v48 }
 0x2e2   :  { %790 = vmatprep.mubr.f32.mxu0 %v1201_v0 }
 0x2e5   :  { %1056 = vmatmul.mubr.msk.f32.gmra.mrb[6].mxu0 %vm396_vm4, %v1054_v49  ;;  %975 = vperm.xlu1 %1175, %v1277_v7  }
 0x2e6   :  { %867 = vmatprep.mubr.f32.mxu0 %v1201_v0 }
 0x34b   :  { %v1156_v51 = vpop.permute.xlu1 %1155  ;;  %v1166_v54 = vpop.permute.xlu0 %1165 }
 0x34c   :  { %v1158_v52 = vunpack.i.h.bf16 %v1156_v51  ;;  %v1157_v53 = vunpack.i.l.bf16 %v1156_v51  ;;  %v1168_v58 = vunpack.i.h.bf16 %v1166_v54  ;;  %v1167_v59 = vunpack.i.l.bf16 %v1166_v54 }
 0x34e   :  { %v685_v60 = vsel %vm46_vm1, %v1157_v53, %v1158_v52  ;;  %v701_v7 = vsel %vm55_vm2, %v1167_v59, %v1168_v58 }
 0x34f   :  { %v1161_v55 = vpop.permute.xlu1 %1160 }
 0x350   :  { %v1163_v56 = vunpack.i.h.bf16 %v1161_v55  ;;  %v1162_v57 = vunpack.i.l.bf16 %v1161_v55 }
 0x352   :  { %v686_v61 = vsel %vm46_vm1, %v1162_v57, %v1163_v56  ;;  %v1089_v1 = vpack.c.bf16 %v1162_v57, %v1157_v53 }
 0x353   :  { %v1171_v62 = vpop.permute.xlu1 %1170  ;;  %v1087_v63 = vpack.c.bf16 %v686_v61, %v685_v60 }
 0x354   :  { %v1173_v5 = vunpack.i.h.bf16 %v1171_v62  ;;  %v1172_v2 = vunpack.i.l.bf16 %v1171_v62 }
 0x355   :  { %1088 = vmatprep.subr.bf16.mxu0 %v1087_v63 }
 0x356   :  { %v1092_v3 = vpack.c.bf16 %v1173_v5, %v1168_v58  ;;  %v702_v4 = vsel %vm55_vm2, %v1172_v2, %v1173_v5  ;;  %1091 = vmatpush1.bf16.msk.msra.mxu0 %vm1076_vm5, %v1089_v1 }
 0x357   :  { %v1095_v8 = vpack.c.bf16 %v702_v4, %v701_v7 }
 0x358   :  { %1094 = vmatprep.subr.msk.bf16.mxu0 %vm1348_vm6, %v1092_v3 }
 0x359   :  { %1061 = vmatmul.mubr.msk.f32.vlgmr.msra.gmra.mrb[4].mxu0 %vm396_vm4, %v709_v6 }
 0x35a   :  { %1096 = vmatpush1.bf16.msra.mxu0 %v1095_v8  ;;  %873 = vmatprep.mubr.f32.mxu0 %v1201_v0 }
 0x35d   :  { %1062 = vmatmul.mubr.msk.f32.gmra.mrb[6].mxu0 %vm396_vm4, %v710_v9  ;;  %v972_v11 = vpop.permute.xlu0 %971 }
 0x35e   :  { %953 = vmatprep.mubr.f32.mxu0 %v1201_v0 }
 0x361   :  { %1067 = vmatmul.mubr.msk.f32.vlgmr.msra.gmra.mrb[4].mxu0 %vm396_vm4, %v1063_v12 }
 0x362   :  { %959 = vmatprep.mubr.f32.mxu0 %v1201_v0 }
 0x364   :  { %v976_v17 = vpop.permute.xlu1 %975 }
 0x365   :  { %1068 = vmatmul.mubr.msk.f32.gmra.mrb[6].mxu0 %vm396_vm4, %v1064_v10 }
 0x434   :  { %v955_v13 = vpop.f32.mrb[4].mxu0 }
 0x435   :  { %v978_v14 = vadd.f32 %v972_v11, %v955_v13  ;;  %v957_v15 = vpop.f32.mrb[5].mxu0 }
 0x436   :  { %v979_v16 = vadd.f32 %v972_v11, %v957_v15 }
 0x437   :  { %v982_v18 = vmax.f32 %v978_v14, 0.0 }
 0x438   :  { %v961_v19 = vpop.f32.mrb[6].mxu0  ;;  %v983_v20 = vmax.f32 %v979_v16, 0.0 }
 0x439   :  { %v980_v21 = vadd.f32 %v976_v17, %v961_v19  ;;  %v963_v22 = vpop.f32.mrb[7].mxu0  ;;  %v986_v23 = vmul.f32 %v982_v18, %v1317_v34 }
 0x43a   :  { %v981_v0 = vadd.f32 %v976_v17, %v963_v22  ;;  %v987_v26 = vmul.f32 %v983_v20, %v1319_v36 }
 0x43b   :  { %v984_v24 = vmax.f32 %v980_v21, 0.0  ;;  %990 = vmax.xlane.f32.xlu0 %v986_v23  ;;  %994 = vadd.xlane.f32.xlu1 %v986_v23 }
 0x43c   :  { %v985_v25 = vmax.f32 %v981_v0, 0.0 }
 0x43d   :  { %v988_v27 = vmul.f32 %v984_v24, %v1317_v34 }
 0x43e   :  { %v989_v28 = vmul.f32 %v985_v25, %v1319_v36 }
 0x43f   :  { %1006 = vadd.xlane.f32.xlu0 %v987_v26  ;;  %992 = vmax.xlane.f32.xlu1 %v988_v27 }
 0x443   :  { %996 = vadd.xlane.f32.xlu0 %v988_v27  ;;  %1008 = vadd.xlane.f32.xlu1 %v989_v28 }
 0x447   :  { %1002 = vmax.xlane.f32.xlu0 %v987_v26  ;;  %1004 = vmax.xlane.f32.xlu1 %v989_v28 }
 0x4c8   :  { %v991_v29 = vpop.xlane.xlu0 %990  ;;  %v995_v30 = vpop.xlane.xlu1 %994 }
 0x4c9   :  { %v998_v37 = vmul.f32 0.0625, %v995_v30 }
 0x4cb   :  { %v1000_v42 = vadd.f32 %v998_v37, %v991_v29 }
 0x4cc   :  { %v1007_v31 = vpop.xlane.xlu0 %1006  ;;  %v993_v32 = vpop.xlane.xlu1 %992 }
 0x4cd   :  { %v1010_v39 = vmul.f32 0.0625, %v1007_v31 }
 0x4d0   :  { %v997_v33 = vpop.xlane.xlu0 %996  ;;  %v1009_v35 = vpop.xlane.xlu1 %1008 }
 0x4d1   :  { %v999_v38 = vmul.f32 0.0625, %v997_v33  ;;  %v1011_v40 = vmul.f32 0.0625, %v1009_v35 }
 0x4d3   :  { %v1001_v43 = vadd.f32 %v999_v38, %v993_v32 }
 0x4d4   :  { %v1003_v34 = vpop.xlane.xlu0 %1002  ;;  %v1005_v41 = vpop.xlane.xlu1 %1004 }
 0x4d5   :  { %v1012_v36 = vadd.f32 %v1010_v39, %v1003_v34  ;;  %v1013_v44 = vadd.f32 %v1011_v40, %v1005_v41 }
 0x4d7   :  { %v1014_v45 = vsel %vm46_vm1, %v1000_v42, %v1012_v36  ;;  %v1015_v46 = vsel %vm46_vm1, %v1001_v43, %v1013_v44 }
 0x4d8   :  { %1017 = vst.msk [vmem:[%s1448_s6] sm:$0xff] %vm1016_vm7, %v1014_v45  ;;  %1018 = vst.msk [vmem:[%s1448_s6 + $0x8] sm:$0xff] %vm1016_vm7, %v1015_v46 }
 0x4d9   :  { %1023 = vsyncpa [#allocation3], 1 }

</bundles_post_ra>
